<compile_context>
chip_gen: v6e
topology: v6e:2x2x1
jax: 0.10.0
libtpu: 0.0.40
codegen_flags: <defaults>
</compile_context>

<pallas_src>
import jax
import jax.numpy as jnp
from jax.experimental import pallas as pl
from jax.experimental.pallas import tpu as pltpu

LANES = 128
SUBLANES = 8
ROW_TILE = 8192          # rows per grid step: 8192*128*4B = 4 MiB per input block


def _num_tensorcores() -> int:
    """Best-effort TensorCores-per-chip query: 2 on v7x, 1 on v5e/v6e."""
    try:
        kind = jax.devices()[0].device_kind.lower()
        if "v7" in kind:
            return 2
    except Exception:
        pass
    return 1


def _make_mse_kernel(valid_rows: int, tiles_per_split: int,
                     num_tiles: int, needs_mask: bool):
    """Kernel accumulating sum((yh-y)^2) into a per-core (1,8,128) partial."""

    def kernel(yh_ref, y_ref, o_ref):
        c = pl.program_id(0)   # core split index ("parallel")
        i = pl.program_id(1)   # row-tile index within this split ("arbitrary")

        @pl.when(i == 0)
        def _():
            o_ref[...] = jnp.zeros_like(o_ref)

        d = yh_ref[...].astype(jnp.float32) - y_ref[...].astype(jnp.float32)

        def accumulate(diff):
            sq = diff * diff
            # Free reshape (splits the sublane-major dim), then a cross-vreg
            # VPU add-reduce into an (8,128) vreg-shaped partial. No per-step
            # XLU work.
            partial = jnp.sum(
                sq.reshape(ROW_TILE // SUBLANES, SUBLANES, LANES), axis=0)
            o_ref[...] += partial.reshape(1, SUBLANES, LANES)

        if needs_mask:
            # UNCLAMPED tile id: phantom tiles (tile_id >= num_tiles) were
            # clamped onto the last real block by the index_map and must be
            # fully zeroed here.
            tile_id = c * tiles_per_split + i

            # Common path: all but the last real tile are fully valid.
            @pl.when(tile_id < num_tiles - 1)
            def _():
                accumulate(d)

            # Edge path: last real (possibly partial) tile + phantom tiles.
            @pl.when(tile_id >= num_tiles - 1)
            def _():
                row0 = tile_id * ROW_TILE
                rows = row0 + jax.lax.broadcasted_iota(
                    jnp.int32, (ROW_TILE, LANES), 0)
                # Zero the *diff* BEFORE squaring: rows past valid_rows hold
                # unspecified (possibly NaN/Inf) VMEM contents.
                accumulate(jnp.where(rows < valid_rows, d, 0.0))
        else:
            accumulate(d)

    return kernel


def mse_loss(yh: jax.Array, y: jax.Array) -> jax.Array:
    """Scalar MSE loss = mean((yh - y)**2), matching torch.nn.MSELoss()."""
    assert yh.shape == y.shape, "MSELoss requires matching shapes"
    n_elems = yh.size

    yh_flat = yh.reshape(-1)
    y_flat = y.reshape(-1)

    valid_rows = n_elems // LANES
    rem = n_elems - valid_rows * LANES

    # Sub-128-element remainder handled in plain JAX (at most 127 elements).
    tail_sum = jnp.float32(0.0)
    if rem:
        dt = (yh_flat[valid_rows * LANES:].astype(jnp.float32)
              - y_flat[valid_rows * LANES:].astype(jnp.float32))
        tail_sum = jnp.sum(dt * dt)

    if valid_rows == 0:
        # Too small for the kernel path; pure-JAX fallback.
        # (n_elems == 0 yields NaN, same as torch.nn.MSELoss on empty input.)
        return tail_sum / jnp.float32(n_elems)

    if rem:
        # TODO(synk): this prefix slice materializes one extra HBM copy of
        # both inputs; it is only taken when numel % 128 != 0, never for the
        # common case of a 128-multiple flattened size.
        yh2d = yh_flat[:valid_rows * LANES].reshape(valid_rows, LANES)
        y2d = y_flat[:valid_rows * LANES].reshape(valid_rows, LANES)
    else:
        yh2d = yh_flat.reshape(valid_rows, LANES)   # free reshape, no copy
        y2d = y_flat.reshape(valid_rows, LANES)

    num_tiles = pl.cdiv(valid_rows, ROW_TILE)
    num_cores = _num_tensorcores()
    num_splits = num_cores if num_tiles >= num_cores else 1
    tiles_per_split = pl.cdiv(num_tiles, num_splits)
    has_phantom = (num_splits * tiles_per_split) != num_tiles
    needs_mask = has_phantom or (valid_rows % ROW_TILE != 0)

    if has_phantom:
        # Clamp phantom tiles of the last split onto the final real tile; their
        # contribution is zeroed by the in-kernel row mask (unclamped tile_id).
        def in_map(c, i):
            return (jnp.minimum(c * tiles_per_split + i, num_tiles - 1), 0)
    else:
        def in_map(c, i):
            return (c * tiles_per_split + i, 0)

    partials = pl.pallas_call(
        _make_mse_kernel(valid_rows, tiles_per_split, num_tiles, needs_mask),
        out_shape=jax.ShapeDtypeStruct((num_splits, SUBLANES, LANES),
                                       jnp.float32),
        grid_spec=pltpu.PrefetchScalarGridSpec(
            num_scalar_prefetch=0,
            grid=(num_splits, tiles_per_split),
            in_specs=[
                pl.BlockSpec((ROW_TILE, LANES), in_map),
                pl.BlockSpec((ROW_TILE, LANES), in_map),
            ],
            # Same block across the i axis -> resident per-core accumulator.
            out_specs=pl.BlockSpec((1, SUBLANES, LANES),
                                   lambda c, i: (c, 0, 0)),
        ),
        compiler_params=pltpu.CompilerParams(
            dimension_semantics=("parallel", "arbitrary"),
            vmem_limit_bytes=48 * 1024 * 1024,   # safe on v7x (64 MiB physical)
        ),
    )(yh2d, y2d)

    return (jnp.sum(partials) + tail_sum) / jnp.float32(n_elems)


if __name__ == "__main__":
    key = jax.random.PRNGKey(0)
    k1, k2 = jax.random.split(key)
    shape = (2, 4, 16, 16)  # [B, C, H, W]
    yh = jax.random.normal(k1, shape, dtype=jnp.float32)
    y = jax.random.normal(k2, shape, dtype=jnp.float32)

    loss = mse_loss(yh, y)
    jax.block_until_ready(loss)

    ref = jnp.mean((yh - y) ** 2)
    assert jnp.allclose(loss, ref, rtol=1e-5, atol=1e-6), (loss, ref)

    print("KERNEL_OK")
</pallas_src>

<mosaic_0001>
module attributes {stable_mosaic.version = 11 : i64} {
  func.func @kernel(%arg0: i32, %arg1: i32, %arg2: memref<8192x128xf32, #tpu.memory_space<vmem>>, %arg3: memref<8192x128xf32, #tpu.memory_space<vmem>>, %arg4: memref<1x8x128xf32, #tpu.memory_space<vmem>>) attributes {dimension_semantics = [#tpu.dimension_semantics<parallel>, #tpu.dimension_semantics<arbitrary>], iteration_bounds = array<i64: 1, 1>, scalar_prefetch = 0 : i64, scratch_operands = 0 : i64, tpu.core_type = #tpu.core_type<tc>, window_params = [{transform_indices = @transform_0, window_bounds = array<i64: 8192, 128>}, {transform_indices = @transform_1, window_bounds = array<i64: 8192, 128>}, {transform_indices = @transform_2, window_bounds = array<i64: 1, 8, 128>}]} {
    %c0_i32 = arith.constant 0 : i32
    %0 = arith.cmpi eq, %arg1, %c0_i32 : i32
    %1 = arith.extui %0 : i1 to i32
    %c0_i32_0 = arith.constant 0 : i32
    %2 = arith.cmpi ne, %1, %c0_i32_0 : i32
    scf.if %2 {
      %cst = arith.constant 0.000000e+00 : f32
      %14 = vector.broadcast %cst : f32 to vector<1x8x128xf32>
      %c0_8 = arith.constant 0 : index
      %c0_9 = arith.constant 0 : index
      %c0_10 = arith.constant 0 : index
      %15 = vector.load %arg4[%c0_8, %c0_9, %c0_10] : memref<1x8x128xf32, #tpu.memory_space<vmem>>, vector<1x8x128xf32>
      tpu.vector_store %arg4[%c0_8, %c0_9, %c0_10], %14 {strides = array<i32>} : memref<1x8x128xf32, #tpu.memory_space<vmem>>, vector<1x8x128xf32>,
    } else {
    }
    %c0 = arith.constant 0 : index
    %c0_1 = arith.constant 0 : index
    %3 = vector.load %arg2[%c0, %c0_1] : memref<8192x128xf32, #tpu.memory_space<vmem>>, vector<8192x128xf32>
    %c0_2 = arith.constant 0 : index
    %c0_3 = arith.constant 0 : index
    %4 = vector.load %arg3[%c0_2, %c0_3] : memref<8192x128xf32, #tpu.memory_space<vmem>>, vector<8192x128xf32>
    %5 = arith.subf %3, %4 : vector<8192x128xf32>
    %c1_i32 = arith.constant 1 : i32
    %6 = arith.muli %arg0, %c1_i32 : i32
    %7 = arith.addi %6, %arg1 : i32
    %c0_i32_4 = arith.constant 0 : i32
    %8 = arith.cmpi slt, %7, %c0_i32_4 : i32
    %9 = arith.extui %8 : i1 to i32
    %c0_i32_5 = arith.constant 0 : i32
    %10 = arith.cmpi ne, %9, %c0_i32_5 : i32
    scf.if %10 {
      %14 = arith.mulf %5, %5 : vector<8192x128xf32>
      %15 = vector.shape_cast %14 : vector<8192x128xf32> to vector<1024x8x128xf32>
      %cst = arith.constant dense<0.000000e+00> : vector<8x128xf32>
      %16 = vector.multi_reduction <add>, %15, %cst [0] : vector<1024x8x128xf32> to vector<8x128xf32>
      %c0_8 = arith.constant 0 : index
      %c0_9 = arith.constant 0 : index
      %c0_10 = arith.constant 0 : index
      %17 = vector.load %arg4[%c0_8, %c0_9, %c0_10] : memref<1x8x128xf32, #tpu.memory_space<vmem>>, vector<1x8x128xf32>
      %18 = vector.shape_cast %16 : vector<8x128xf32> to vector<1x8x128xf32>
      %19 = arith.addf %17, %18 : vector<1x8x128xf32>
      %c0_11 = arith.constant 0 : index
      %c0_12 = arith.constant 0 : index
      %c0_13 = arith.constant 0 : index
      %20 = vector.load %arg4[%c0_11, %c0_12, %c0_13] : memref<1x8x128xf32, #tpu.memory_space<vmem>>, vector<1x8x128xf32>
      tpu.vector_store %arg4[%c0_11, %c0_12, %c0_13], %19 {strides = array<i32>} : memref<1x8x128xf32, #tpu.memory_space<vmem>>, vector<1x8x128xf32>,
    } else {
    }
    %c0_i32_6 = arith.constant 0 : i32
    %11 = arith.cmpi sge, %7, %c0_i32_6 : i32
    %12 = arith.extui %11 : i1 to i32
    %c0_i32_7 = arith.constant 0 : i32
    %13 = arith.cmpi ne, %12, %c0_i32_7 : i32
    scf.if %13 {
      %c8192_i32 = arith.constant 8192 : i32
      %14 = arith.muli %7, %c8192_i32 : i32
      %15 = tpu.iota {dimensions = array<i32: 0>} : vector<8192x128xi32>
      %16 = vector.broadcast %14 : i32 to vector<8192x128xi32>
      %17 = arith.addi %16, %15 : vector<8192x128xi32>
      %c16_i32 = arith.constant 16 : i32
      %18 = vector.broadcast %c16_i32 : i32 to vector<8192x128xi32>
      %19 = arith.cmpi slt, %17, %18 : vector<8192x128xi32>
      %cst = arith.constant 0.000000e+00 : f32
      %20 = vector.broadcast %cst : f32 to vector<8192x128xf32>
      %21 = arith.select %19, %5, %20 : vector<8192x128xi1>, vector<8192x128xf32>
      %22 = arith.mulf %21, %21 : vector<8192x128xf32>
      %23 = vector.shape_cast %22 : vector<8192x128xf32> to vector<1024x8x128xf32>
      %cst_8 = arith.constant dense<0.000000e+00> : vector<8x128xf32>
      %24 = vector.multi_reduction <add>, %23, %cst_8 [0] : vector<1024x8x128xf32> to vector<8x128xf32>
      %c0_9 = arith.constant 0 : index
      %c0_10 = arith.constant 0 : index
      %c0_11 = arith.constant 0 : index
      %25 = vector.load %arg4[%c0_9, %c0_10, %c0_11] : memref<1x8x128xf32, #tpu.memory_space<vmem>>, vector<1x8x128xf32>
      %26 = vector.shape_cast %24 : vector<8x128xf32> to vector<1x8x128xf32>
      %27 = arith.addf %25, %26 : vector<1x8x128xf32>
      %c0_12 = arith.constant 0 : index
      %c0_13 = arith.constant 0 : index
      %c0_14 = arith.constant 0 : index
      %28 = vector.load %arg4[%c0_12, %c0_13, %c0_14] : memref<1x8x128xf32, #tpu.memory_space<vmem>>, vector<1x8x128xf32>
      tpu.vector_store %arg4[%c0_12, %c0_13, %c0_14], %27 {strides = array<i32>} : memref<1x8x128xf32, #tpu.memory_space<vmem>>, vector<1x8x128xf32>,
    } else {
    }
    return
  }
  func.func @transform_0(%arg0: i32, %arg1: i32) -> (i32, i32) {
    %c1_i32 = arith.constant 1 : i32
    %0 = arith.muli %arg0, %c1_i32 : i32
    %1 = arith.addi %0, %arg1 : i32
    %c0_i32 = arith.constant 0 : i32
    %c0_i32_0 = arith.constant 0 : i32
    return %1, %c0_i32 : i32, i32
  }
  func.func @transform_1(%arg0: i32, %arg1: i32) -> (i32, i32) {
    %c1_i32 = arith.constant 1 : i32
    %0 = arith.muli %arg0, %c1_i32 : i32
    %1 = arith.addi %0, %arg1 : i32
    %c0_i32 = arith.constant 0 : i32
    %c0_i32_0 = arith.constant 0 : i32
    return %1, %c0_i32 : i32, i32
  }
  func.func @transform_2(%arg0: i32, %arg1: i32) -> (i32, i32, i32) {
    %c0_i32 = arith.constant 0 : i32
    %c0_i32_0 = arith.constant 0 : i32
    %c0_i32_1 = arith.constant 0 : i32
    return %arg0, %c0_i32, %c0_i32_0 : i32, i32, i32
  }
}

</mosaic_0001>

<bundles_post_ra>
// kernel: tpu_custom_call.1
= control target key start
LH: loop header
LB: loop body
LE: loop exit
PB: predicated region body
PF: predicated region fallthrough
CT: control target
= control target key end

     0   :  { %7 = vsyncpa [#allocation3], 0  ;;  %s11466_s0 = inlined_call_operand.hbm [shape: f32[16,128], index: 0, kind: input, shape index: {}]   ;;  %s11467_s1 = inlined_call_operand.hbm [shape: f32[16,128], index: 1, kind: input, shape index: {}]   ;;  %s11468_s2 = inlined_call_operand.hbm [shape: f32[1,8,128], index: 2, kind: output, shape index: {}]  }
   0x1   :  { %8 = vsyncpa [#allocation6], 0 }
   0x2   :  { %9 = vsyncpa [#allocation4], 0 }
   0x3   :  { %18 = vsyncadd [#allocation3], 130816  ;;  %s11437_s9 = smov [#allocation2]  }
   0x4   :  { %s23_s10 = sshll.u32 %s11437_s9, 4  ;;  %s24_s10 = int_to_ptr.vmem [resolvable:$true] %s23_s10 }
   0x5   :  { %s11379_s11 = scalar_lea.vmem %s24_s10, 256  ;;  %s11383_s12 = scalar_lea.vmem %s24_s10, 131072 }
   0x6   :  { %p11380_p0 = scmp.ne.s32.totalorder %s24_s10, %s11379_s11  ;;  %p11384_p1 = scmp.lt.s32.totalorder %s24_s10, %s24_s10 }
   0x7   :  { %p11385_p2 = scmp.lt.s32.totalorder %s11383_s12, %s11379_s11 }
   0x9   :  { %p11386_p3 = por %p11385_p2, %p11384_p1 }
   0xb   :  { %p11387_p4 = pnand %p11386_p3, %p11380_p0 }
   0xd   :  { %11390 = shalt.err (!%p11387_p4)
}
   0xe   :  { %s11438_s13 = smov 128   ;;  %s11439_s14 = smov 8  }
   0xf   :  { %29 = dma.hbm_to_vmem [thread:$0]  %s11466_s0, 256, %s24_s10, [#allocation3], %s11438_s13, %s11438_s13, %s11439_s14  }
  0x10   :  { %38 = vsyncadd [#allocation6], 130816  ;;  %s11440_s17 = smov [#allocation5]  }
  0x11   :  { %s43_s18 = sshll.u32 %s11440_s17, 4  ;;  %s44_s18 = int_to_ptr.vmem [resolvable:$true] %s43_s18 }
  0x12   :  { %s11399_s19 = scalar_lea.vmem %s44_s18, 256  ;;  %s11403_s20 = scalar_lea.vmem %s44_s18, 131072 }
  0x13   :  { %p11400_p5 = scmp.ne.s32.totalorder %s44_s18, %s11399_s19  ;;  %p11404_p6 = scmp.lt.s32.totalorder %s44_s18, %s44_s18 }
  0x14   :  { %p11405_p7 = scmp.lt.s32.totalorder %s11403_s20, %s11399_s19 }
  0x16   :  { %p11406_p8 = por %p11405_p7, %p11404_p6 }
  0x18   :  { %p11407_p9 = pnand %p11406_p8, %p11400_p5 }
  0x1a   :  { %11410 = shalt.err (!%p11407_p9)
}
  0x1b   :  { %49 = dma.hbm_to_vmem [thread:$0]  %s11467_s1, 256, %s44_s18, [#allocation6], %s11438_s13, %s11438_s13, %s11439_s14  }
  0x1c   :  { %11431 = dma.done.wait [#allocation3], 131072  }
  0x1d   :  { %11432 = vsyncadd [#allocation3], 4294836224 }
  0x1e   :  { %11433 = dma.done.wait [#allocation6], 131072  }
  0x1f   :  { %11434 = vsyncadd [#allocation6], 4294836224  ;;  %v69_v0 = vld [vmem:[#allocation2] sm:$0xff]  ;;  %v70_v1 = vld [vmem:[#allocation2 + $0x8] sm:$0xff]  ;;  %s11441_s0 = smov [#allocation7]  }
  0x20   :  { %v1093_v2 = vld [vmem:[#allocation5] sm:$0xff]  ;;  %v1094_v3 = vld [vmem:[#allocation5 + $0x8] sm:$0xff]  ;;  %s11355_s23 = sshll.u32 %s11441_s0, 4  ;;  %s11356_s23 = int_to_ptr.vmem [resolvable:$true] %s11355_s23 }
  0x21   :  { %v2117_v4 = vsub.f32 %v69_v0, %v1093_v2  ;;  %v2118_v5 = vsub.f32 %v70_v1, %v1094_v3  ;;  %s11411_s24 = scalar_lea.vmem %s11356_s23, 128  ;;  %p11416_p11 = scmp.lt.s32.totalorder %s11356_s23, %s11356_s23 }
  0x22   :  { %p11412_p10 = scmp.ne.s32.totalorder %s11356_s23, %s11411_s24  ;;  %p11417_p12 = scmp.lt.s32.totalorder %s11411_s24, %s11411_s24 }
  0x23   :  { %v9299_v6 = vmul.f32 %v2117_v4, %v2117_v4  ;;  %v9300_v7 = vmul.f32 %v2118_v5, %v2118_v5 }
  0x24   :  { %p11418_p13 = por %p11417_p12, %p11416_p11 }
  0x25   :  { %v10323_v8 = vadd.f32 %v9300_v7, %v9299_v6 }
  0x26   :  { %p11419_p0 = pnand %p11418_p13, %p11412_p10 }
  0x27   :  { %11348 = vst [vmem:[#allocation7] sm:$0xff] %v10323_v8 }
  0x28   :  { %11422 = shalt.err (!%p11419_p0)
}
  0x29   :  { %11358 = dma.vmem_to_hbm [thread:$0]  %s11356_s23, 128, %s11468_s2, [#allocation4]  }
  0x2a   :  { %11435 = dma.done.wait [#allocation4], 128  }
  0x2b   :  { %11436 = vsyncadd [#allocation4], 4294967168 }
  0x2c   :  { %11362 = vsyncpa [#allocation3], 1 }
  0x2d   :  { %11363 = vsyncpa [#allocation6], 1 }
  0x2e   :  { %11364 = vsyncpa [#allocation4], 1 }

</bundles_post_ra>
